<compile_context>
chip_gen: v7x
topology: tpu7x:2x2x1
jax: 0.10.0
libtpu: 0.0.40
codegen_flags: <defaults>
</compile_context>

<pallas_src>
import functools

import jax
import jax.numpy as jnp
from jax.experimental import pallas as pl
from jax.experimental.pallas import tpu as pltpu


def _fold_allreduce(row, fold):
    """All-reduce a (1, lanes) row across `fold` lane groups of lanes//fold
    channels via log2(fold) cyclic lane rotations (XLU; result stays
    group-replicated). Valid because 128 % C == 0 makes fold a power of two."""
    lanes = row.shape[1]
    step = lanes // fold
    while step < lanes:
        row = row + pltpu.roll(row, shift=step, axis=1)
        step *= 2
    return row


def _bn0d_fused_kernel(x_ref, gamma_ref, beta_ref, o_ref, *, eps, inv_n, fold):
    """One (rows, tc) tile holding the full batch extent for its channels.

    Two-pass moments (mean, then sum((x - mean)^2)): numerically robust and
    effectively free since the tile is resident in VMEM. If fold > 1 the lane
    axis holds `fold` batch groups of lanes//fold channels (lane-dense layout
    for small C); per-channel sums are all-reduced across groups with rolls.
    """
    x = x_ref[...].astype(jnp.float32)                    # (rows, tc)

    s1 = jnp.sum(x, axis=0, keepdims=True)                # (1, tc)
    if fold > 1:
        s1 = _fold_allreduce(s1, fold)
    mean = s1 * inv_n

    d = x - mean
    s2 = jnp.sum(d * d, axis=0, keepdims=True)            # (1, tc)
    if fold > 1:
        s2 = _fold_allreduce(s2, fold)
    var = s2 * inv_n                                       # biased variance

    inv_std = jax.lax.rsqrt(var + eps)
    scale = gamma_ref[...].astype(jnp.float32) * inv_std   # (1, tc)
    shift = beta_ref[...].astype(jnp.float32) - mean * scale
    o_ref[...] = (x * scale + shift).astype(o_ref.dtype)


def _bn0d_stats_kernel(x_ref, gamma_ref, beta_ref, scale_ref, shift_ref,
                       s1_ref, s2_ref, *, eps, inv_n, fold):
    """Row-tiled stats pass: accumulate per-lane s1/s2 over row tiles, then
    finalize per-channel affine (scale, shift) on the last row tile."""
    r = pl.program_id(1)

    @pl.when(r == 0)
    def _():
        s1_ref[...] = jnp.zeros_like(s1_ref)
        s2_ref[...] = jnp.zeros_like(s2_ref)

    x = x_ref[...].astype(jnp.float32)
    s1_ref[...] += jnp.sum(x, axis=0, keepdims=True)
    s2_ref[...] += jnp.sum(x * x, axis=0, keepdims=True)

    @pl.when(r == pl.num_programs(1) - 1)
    def _():
        s1 = s1_ref[...]
        s2 = s2_ref[...]
        if fold > 1:
            s1 = _fold_allreduce(s1, fold)
            s2 = _fold_allreduce(s2, fold)
        mean = s1 * inv_n
        # TODO(synk): moment form can cancel for |mean| >> std; kept only on
        # this large-N fallback to stay at 2 reads + 1 write of the array
        # (the resident path above uses the two-pass form).
        var = jnp.maximum(s2 * inv_n - mean * mean, 0.0)
        inv_std = jax.lax.rsqrt(var + eps)
        scale = gamma_ref[...].astype(jnp.float32) * inv_std
        shift = beta_ref[...].astype(jnp.float32) - mean * scale
        scale_ref[...] = scale
        shift_ref[...] = shift


def _bn0d_apply_kernel(x_ref, scale_ref, shift_ref, o_ref):
    """Row-tiled normalize pass: y = x * scale + shift (all tiles parallel)."""
    x = x_ref[...].astype(jnp.float32)
    o_ref[...] = (x * scale_ref[...] + shift_ref[...]).astype(o_ref.dtype)


def _vmem_params(vmem_budget_bytes=None):
    """Returns (tile-sizing budget, scoped-VMEM limit), generation-aware:
    ~half of physical VMEM for tiles (64 MiB on v5e/v6e, 32 MiB on v7x)."""
    try:
        cap = int(pltpu.get_tpu_info().vmem_capacity_bytes)
    except Exception:  # conservative (v7x-sized) fallback
        cap = 64 << 20
    budget = max(8 << 20, min(cap // 2, 64 << 20))
    if vmem_budget_bytes is not None:
        budget = int(vmem_budget_bytes)
    limit = int(min(cap - (2 << 20), max(budget + (16 << 20), 32 << 20)))
    return budget, limit


def _step_bytes(rows, tc, itemsize):
    # Double-buffered x-in + y-out tiles at the input dtype, plus the two f32
    # temporaries (x and x - mean) the fused kernel materializes per tile.
    return 2 * 2 * rows * tc * itemsize + 2 * rows * tc * 4


def _pick_channel_tile(rows, lanes, itemsize, budget):
    """Largest 128-multiple divisor of `lanes` whose per-grid-step footprint
    fits `budget`. For bandwidth-bound sizes prefer <=~4 MiB steps with >=2
    pipelined grid steps (keeps DMA busy, lets megacore shard channels).
    Returns None when even tc=128 with the full row extent does not fit
    (caller falls back to the row-tiled two-pass structure)."""
    assert lanes % 128 == 0
    divisors = [d for d in range(128, lanes + 1, 128) if lanes % d == 0]
    fitting = [d for d in divisors if _step_bytes(rows, d, itemsize) <= budget]
    if not fitting:
        return None
    tc = fitting[-1]
    total_bytes = rows * lanes * itemsize
    if total_bytes > (2 << 20):  # past the latency-bound regime
        capped = [d for d in fitting
                  if _step_bytes(rows, d, itemsize) <= (4 << 20)
                  and lanes // d >= 2]
        if capped:
            tc = capped[-1]
    return tc


def _pick_row_tiles(rows, lanes, itemsize, budget):
    """(tr, tc) for the row-tiled path: lane tile = largest 128-multiple
    divisor of lanes capped at 512; row tile = multiple of 8 sized for a
    <=~4 MiB per-step footprint (never below 8)."""
    tc = 128
    for d in range(128, min(lanes, 512) + 1, 128):
        if lanes % d == 0:
            tc = d
    per_row = 2 * 2 * tc * itemsize + 2 * tc * 4
    per_step = max(per_row * 8, min(budget, 4 << 20))
    tr = max(8, (per_step // per_row) // 8 * 8)
    tr = min(tr, max(8, ((rows + 7) // 8) * 8))
    return int(tr), tc


def batchnorm_adapter_0d(feat, weight, bias, *, eps=1e-5, vmem_budget_bytes=None):
    """Training-mode BatchNorm1d forward. feat: [N, C]; weight/bias: [C]."""
    n, c = feat.shape
    inv_n = 1.0 / n
    itemsize = jnp.dtype(feat.dtype).itemsize
    gamma = weight.reshape(1, c).astype(jnp.float32)
    beta = bias.reshape(1, c).astype(jnp.float32)

    # --- lane layout: fold small C into lanes, else pad C to a 128 multiple ---
    fold, c_pad = 1, c
    if c < 128 and 128 % c == 0 and n % (128 // c) == 0:
        fold = 128 // c
    elif c % 128 != 0:
        c_pad = ((c + 127) // 128) * 128

    if fold > 1:
        rows, lanes = n // fold, fold * c
        x = feat.reshape(rows, lanes)
        gamma_k = jnp.tile(gamma, (1, fold))
        beta_k = jnp.tile(beta, (1, fold))
    else:
        rows, lanes = n, c_pad
        if c_pad != c:
            # Lane-aligned width => full-width (unmasked) stores and a
            # tileable channel grid. gamma=1 / beta=0 / x=0 keep pads finite.
            x = jnp.pad(feat, ((0, 0), (0, c_pad - c)))
            gamma_k = jnp.pad(gamma, ((0, 0), (0, c_pad - c)), constant_values=1.0)
            beta_k = jnp.pad(beta, ((0, 0), (0, c_pad - c)))
        else:
            x, gamma_k, beta_k = feat, gamma, beta

    budget, vmem_limit = _vmem_params(vmem_budget_bytes)
    tc = _pick_channel_tile(rows, lanes, itemsize, budget)

    if tc is not None:
        # ---- full batch extent resident per channel tile (common case) ----
        kernel = functools.partial(_bn0d_fused_kernel, eps=eps, inv_n=inv_n,
                                   fold=fold)
        out = pl.pallas_call(
            kernel,
            out_shape=jax.ShapeDtypeStruct((rows, lanes), feat.dtype),
            grid_spec=pltpu.PrefetchScalarGridSpec(
                num_scalar_prefetch=0,
                grid=(lanes // tc,),
                in_specs=[
                    pl.BlockSpec((rows, tc), lambda j: (0, j)),
                    pl.BlockSpec((1, tc), lambda j: (0, j)),
                    pl.BlockSpec((1, tc), lambda j: (0, j)),
                ],
                out_specs=pl.BlockSpec((rows, tc), lambda j: (0, j)),
            ),
            compiler_params=pltpu.CompilerParams(
                dimension_semantics=("parallel",),
                vmem_limit_bytes=vmem_limit),
        )(x, gamma_k, beta_k)
    else:
        # ---- large N fallback: row-tiled two-pass (stats, then apply) ----
        # TODO(synk): stats pass has no parallel axis when lanes == 128, so it
        #             runs on one TensorCore on v7x (apply pass shards fine).
        tr, tc2 = _pick_row_tiles(rows, lanes, itemsize, budget)
        rows_pad = ((rows + tr - 1) // tr) * tr
        if rows_pad != rows:
            # Zero rows add 0 to both moments; inv_n uses the true N.
            x = jnp.pad(x, ((0, rows_pad - rows), (0, 0)))

        stats = functools.partial(_bn0d_stats_kernel, eps=eps, inv_n=inv_n,
                                  fold=fold)
        scale, shift = pl.pallas_call(
            stats,
            out_shape=(jax.ShapeDtypeStruct((1, lanes), jnp.float32),
                       jax.ShapeDtypeStruct((1, lanes), jnp.float32)),
            grid_spec=pltpu.PrefetchScalarGridSpec(
                num_scalar_prefetch=0,
                grid=(lanes // tc2, rows_pad // tr),
                in_specs=[
                    pl.BlockSpec((tr, tc2), lambda j, r: (r, j)),
                    pl.BlockSpec((1, tc2), lambda j, r: (0, j)),
                    pl.BlockSpec((1, tc2), lambda j, r: (0, j)),
                ],
                out_specs=(
                    pl.BlockSpec((1, tc2), lambda j, r: (0, j)),
                    pl.BlockSpec((1, tc2), lambda j, r: (0, j)),
                ),
                scratch_shapes=[pltpu.VMEM((1, tc2), jnp.float32),
                                pltpu.VMEM((1, tc2), jnp.float32)],
            ),
            compiler_params=pltpu.CompilerParams(
                dimension_semantics=("parallel", "arbitrary"),
                vmem_limit_bytes=vmem_limit),
        )(x, gamma_k, beta_k)

        out = pl.pallas_call(
            _bn0d_apply_kernel,
            out_shape=jax.ShapeDtypeStruct((rows_pad, lanes), feat.dtype),
            grid_spec=pltpu.PrefetchScalarGridSpec(
                num_scalar_prefetch=0,
                grid=(lanes // tc2, rows_pad // tr),
                in_specs=[
                    pl.BlockSpec((tr, tc2), lambda j, r: (r, j)),
                    pl.BlockSpec((1, tc2), lambda j, r: (0, j)),
                    pl.BlockSpec((1, tc2), lambda j, r: (0, j)),
                ],
                out_specs=pl.BlockSpec((tr, tc2), lambda j, r: (r, j)),
            ),
            compiler_params=pltpu.CompilerParams(
                dimension_semantics=("parallel", "parallel"),
                vmem_limit_bytes=vmem_limit),
        )(x, scale, shift)
        out = out[:rows]

    if fold > 1:
        return out.reshape(n, c)
    if c_pad != c:
        return out[:, :c]
    return out


def _reference(feat, weight, bias, eps=1e-5):
    mean = jnp.mean(feat, axis=0, keepdims=True)
    var = jnp.mean((feat - mean) ** 2, axis=0, keepdims=True)
    return (feat - mean) / jnp.sqrt(var + eps) * weight[None, :] + bias[None, :]


if __name__ == "__main__":
    k0, k1, k2, k3, k4, k5 = jax.random.split(jax.random.PRNGKey(0), 6)

    # Case 1: module-default sizes (small C -> lane-dense folded path).
    batch, d_feat = 8, 32
    feat = jax.random.normal(k0, (batch, d_feat), dtype=jnp.float32)
    weight = jnp.ones((d_feat,), dtype=jnp.float32)     # gamma (default init)
    bias = jnp.zeros((d_feat,), dtype=jnp.float32)      # beta  (default init)
    out = jax.block_until_ready(batchnorm_adapter_0d(feat, weight, bias, eps=1e-5))
    ref = _reference(feat, weight, bias)
    assert jnp.allclose(out, ref, atol=1e-4, rtol=1e-5), "mismatch (folded path)"

    # Case 2: larger C, non-trivial gamma/beta -> small-problem early-out
    # (single lane-dense block, no channel grid for a 32 KiB array).
    n2, c2 = 16, 512
    feat2 = jax.random.normal(k1, (n2, c2), dtype=jnp.float32)
    w2 = 1.0 + 0.1 * jax.random.normal(k2, (c2,), dtype=jnp.float32)
    b2 = 0.1 * jax.random.normal(k3, (c2,), dtype=jnp.float32)
    out2 = jax.block_until_ready(batchnorm_adapter_0d(feat2, w2, b2, eps=1e-5))
    ref2 = _reference(feat2, w2, b2)
    assert jnp.allclose(out2, ref2, atol=1e-4, rtol=1e-5), "mismatch (dense path)"

    # Case 3: non-128-aligned C with nonzero mean -> padded lanes, full-width
    # stores, two-pass variance robustness.
    n3, c3 = 12, 200
    feat3 = 3.0 + jax.random.normal(k4, (n3, c3), dtype=jnp.float32)
    w3 = jnp.linspace(0.5, 1.5, c3, dtype=jnp.float32)
    b3 = jnp.linspace(-0.2, 0.2, c3, dtype=jnp.float32)
    out3 = jax.block_until_ready(batchnorm_adapter_0d(feat3, w3, b3, eps=1e-5))
    ref3 = _reference(feat3, w3, b3)
    assert jnp.allclose(out3, ref3, atol=1e-4, rtol=1e-5), "mismatch (padded path)"

    # Case 4: force the row-tiled two-pass fallback via a tiny tile budget.
    n4, c4 = 64, 256
    feat4 = jax.random.normal(k5, (n4, c4), dtype=jnp.float32)
    w4 = jnp.ones((c4,), dtype=jnp.float32)
    b4 = jnp.zeros((c4,), dtype=jnp.float32)
    out4 = jax.block_until_ready(
        batchnorm_adapter_0d(feat4, w4, b4, eps=1e-5, vmem_budget_bytes=96 << 10))
    ref4 = _reference(feat4, w4, b4)
    assert jnp.allclose(out4, ref4, atol=1e-4, rtol=1e-5), "mismatch (row-tiled path)"

    print("KERNEL_OK")
</pallas_src>

<mosaic_0001>
module attributes {stable_mosaic.version = 11 : i64} {
  func.func @_bn0d_fused_kernel(%arg0: i32, %arg1: memref<2x128xf32, #tpu.memory_space<vmem>>, %arg2: memref<1x128xf32, #tpu.memory_space<vmem>>, %arg3: memref<1x128xf32, #tpu.memory_space<vmem>>, %arg4: memref<2x128xf32, #tpu.memory_space<vmem>>) attributes {dimension_semantics = [#tpu.dimension_semantics<parallel>], iteration_bounds = array<i64: 1>, scalar_prefetch = 0 : i64, scratch_operands = 0 : i64, tpu.core_type = #tpu.core_type<tc>, window_params = [{transform_indices = @transform_0, window_bounds = array<i64: 2, 128>}, {transform_indices = @transform_1, window_bounds = array<i64: 1, 128>}, {transform_indices = @transform_2, window_bounds = array<i64: 1, 128>}, {transform_indices = @transform_3, window_bounds = array<i64: 2, 128>}]} {
    %c0 = arith.constant 0 : index
    %c0_0 = arith.constant 0 : index
    %0 = vector.load %arg1[%c0, %c0_0] : memref<2x128xf32, #tpu.memory_space<vmem>>, vector<2x128xf32>
    %cst = arith.constant dense<0.000000e+00> : vector<128xf32>
    %1 = vector.multi_reduction <add>, %0, %cst [0] : vector<2x128xf32> to vector<128xf32>
    %2 = vector.shape_cast %1 : vector<128xf32> to vector<1x128xf32>
    %c32_i32 = arith.constant 32 : i32
    %3 = tpu.dynamic_rotate %2 by %c32_i32 dim 1 : vector<1x128xf32>, i32 -> vector<1x128xf32>
    %4 = arith.addf %2, %3 : vector<1x128xf32>
    %c64_i32 = arith.constant 64 : i32
    %5 = tpu.dynamic_rotate %4 by %c64_i32 dim 1 : vector<1x128xf32>, i32 -> vector<1x128xf32>
    %6 = arith.addf %4, %5 : vector<1x128xf32>
    %cst_1 = arith.constant 1.250000e-01 : f32
    %7 = vector.broadcast %cst_1 : f32 to vector<1x128xf32>
    %8 = arith.mulf %6, %7 : vector<1x128xf32>
    %9 = vector.broadcast %8 : vector<1x128xf32> to vector<2x128xf32>
    %10 = arith.subf %0, %9 : vector<2x128xf32>
    %11 = arith.mulf %10, %10 : vector<2x128xf32>
    %cst_2 = arith.constant dense<0.000000e+00> : vector<128xf32>
    %12 = vector.multi_reduction <add>, %11, %cst_2 [0] : vector<2x128xf32> to vector<128xf32>
    %13 = vector.shape_cast %12 : vector<128xf32> to vector<1x128xf32>
    %c32_i32_3 = arith.constant 32 : i32
    %14 = tpu.dynamic_rotate %13 by %c32_i32_3 dim 1 : vector<1x128xf32>, i32 -> vector<1x128xf32>
    %15 = arith.addf %13, %14 : vector<1x128xf32>
    %c64_i32_4 = arith.constant 64 : i32
    %16 = tpu.dynamic_rotate %15 by %c64_i32_4 dim 1 : vector<1x128xf32>, i32 -> vector<1x128xf32>
    %17 = arith.addf %15, %16 : vector<1x128xf32>
    %cst_5 = arith.constant 1.250000e-01 : f32
    %18 = vector.broadcast %cst_5 : f32 to vector<1x128xf32>
    %19 = arith.mulf %17, %18 : vector<1x128xf32>
    %cst_6 = arith.constant 9.99999974E-6 : f32
    %20 = vector.broadcast %cst_6 : f32 to vector<1x128xf32>
    %21 = arith.addf %19, %20 : vector<1x128xf32>
    %22 = math.rsqrt %21 : vector<1x128xf32>
    %c0_7 = arith.constant 0 : index
    %c0_8 = arith.constant 0 : index
    %23 = vector.load %arg2[%c0_7, %c0_8] : memref<1x128xf32, #tpu.memory_space<vmem>>, vector<1x128xf32>
    %24 = arith.mulf %23, %22 : vector<1x128xf32>
    %c0_9 = arith.constant 0 : index
    %c0_10 = arith.constant 0 : index
    %25 = vector.load %arg3[%c0_9, %c0_10] : memref<1x128xf32, #tpu.memory_space<vmem>>, vector<1x128xf32>
    %26 = arith.mulf %8, %24 : vector<1x128xf32>
    %27 = arith.subf %25, %26 : vector<1x128xf32>
    %28 = vector.broadcast %24 : vector<1x128xf32> to vector<2x128xf32>
    %29 = arith.mulf %0, %28 : vector<2x128xf32>
    %30 = vector.broadcast %27 : vector<1x128xf32> to vector<2x128xf32>
    %31 = arith.addf %29, %30 : vector<2x128xf32>
    %c0_11 = arith.constant 0 : index
    %c0_12 = arith.constant 0 : index
    %32 = vector.load %arg4[%c0_11, %c0_12] : memref<2x128xf32, #tpu.memory_space<vmem>>, vector<2x128xf32>
    tpu.vector_store %arg4[%c0_11, %c0_12], %31 {strides = array<i32>} : memref<2x128xf32, #tpu.memory_space<vmem>>, vector<2x128xf32>,
    return
  }
  func.func @transform_0(%arg0: i32) -> (i32, i32) {
    %c0_i32 = arith.constant 0 : i32
    %c0_i32_0 = arith.constant 0 : i32
    return %c0_i32, %arg0 : i32, i32
  }
  func.func @transform_1(%arg0: i32) -> (i32, i32) {
    %c0_i32 = arith.constant 0 : i32
    %c0_i32_0 = arith.constant 0 : i32
    return %c0_i32, %arg0 : i32, i32
  }
  func.func @transform_2(%arg0: i32) -> (i32, i32) {
    %c0_i32 = arith.constant 0 : i32
    %c0_i32_0 = arith.constant 0 : i32
    return %c0_i32, %arg0 : i32, i32
  }
  func.func @transform_3(%arg0: i32) -> (i32, i32) {
    %c0_i32 = arith.constant 0 : i32
    %c0_i32_0 = arith.constant 0 : i32
    return %c0_i32, %arg0 : i32, i32
  }
}

</mosaic_0001>

<bundles_post_ra>
// kernel: tpu_custom_call.1
= control target key start
LH: loop header
LB: loop body
LE: loop exit
PB: predicated region body
PF: predicated region fallthrough
CT: control target
= control target key end

     0   :  { %8 = vsyncpa [#allocation3], 0  ;;  %s210_s0 = inlined_call_operand.hbm [shape: f32[2,128], index: 0, kind: input, shape index: {}]   ;;  %s211_s1 = inlined_call_operand.vmem [shape: f32[1,128], index: 1, kind: input, shape index: {}]   ;;  %s212_s2 = inlined_call_operand.vmem [shape: f32[1,128], index: 2, kind: input, shape index: {}]   ;;  %s213_s3 = inlined_call_operand.hbm [shape: f32[2,128], index: 3, kind: output, shape index: {}]  }
   0x1   :  { %9 = vsyncpa [#allocation4], 0  ;;  %s154_s12 = smov [#allocation2]   ;;  %s106_s16 = scalar_lea.hbm %s210_s0, 32 }
   0x2   :  { %s16_s13 = sshll.u32 %s154_s12, 4  ;;  %p107_p0 = scmp.ne.s32.totalorder %s210_s0, %s106_s16  ;;  %s17_s13 = int_to_ptr.vmem [resolvable:$true] %s16_s13 }
   0x3   :  { %p110_p1 = scmp.lt.u32.totalorder %s106_s16, %s210_s0 }
   0x5   :  { %p112_p2 = pnand %p110_p1, %p107_p0 }
   0x7   :  { %115 = shalt.err (!%p112_p2)
}
   0x8   :  { %s116_s21 = scalar_lea.vmem %s17_s13, 32  ;;  %p121_p4 = scmp.lt.s32.totalorder %s17_s13, %s17_s13 }
   0x9   :  { %p117_p3 = scmp.ne.s32.totalorder %s17_s13, %s116_s21  ;;  %p122_p5 = scmp.lt.s32.totalorder %s116_s21, %s116_s21 }
   0xb   :  { %p123_p6 = por %p122_p5, %p121_p4 }
   0xd   :  { %p124_p7 = pnand %p123_p6, %p117_p3 }
   0xf   :  { %127 = shalt.err (!%p124_p7)
}
  0x10   :  { %19 = dma.hbm_to_vmem [thread:$0]  %s210_s0, 32, %s17_s13, [#allocation3]  }
  0x11   :  { %150 = dma.done.wait [#allocation3], 32  }
  0x12   :  { %151 = vsyncadd [#allocation3], 4294967264  ;;  %vm28_vm0 = vcmask 1041408   ;;  %v27_v0 = vld [vmem:[#allocation2] sm:$0x3]  ;;  %s155_s24 = smov 32   ;;  %v43_v10 = vlaneseq }
  0x13   :  { %v29_v1 = vsel %vm28_vm0, %v27_v0, 0.0  ;;  %s156_s25 = smov 64   ;;  %v65_v32 = vld [vmem:[%s211_s1] sm:$0x1]  ;;  %s157_s29 = smov [#allocation5]  }
  0x14   :  { %v30_v2 = vrot.slane %v29_v1, 4  ;;  %v44_v11 = vshrl.u32 %v43_v10, 7  ;;  %v67_v35 = vld [vmem:[%s212_s2] sm:$0x1]  ;;  %s91_s30 = sshll.u32 %s157_s29, 4  ;;  %s92_s30 = int_to_ptr.vmem [resolvable:$true] %s91_s30 }
  0x15   :  { %s128_s4 = scalar_lea.vmem %s92_s30, 32  ;;  %p133_p9 = scmp.lt.s32.totalorder %s92_s30, %s92_s30 }
  0x16   :  { %v31_v3 = vadd.f32 %v30_v2, %v29_v1  ;;  %v45_v13 = vsub.s32 0, %v44_v11  ;;  %p129_p8 = scmp.ne.s32.totalorder %s92_s30, %s128_s4  ;;  %p134_p10 = scmp.lt.s32.totalorder %s128_s4, %s128_s4 }
  0x18   :  { %v32_v4 = vrot.slane %v31_v3, 2  ;;  %p135_p11 = por %p134_p10, %p133_p9 }
  0x1a   :  { %v33_v5 = vadd.f32 %v32_v4, %v31_v3  ;;  %p136_p12 = pnand %p135_p11, %p129_p8 }
  0x1c   :  { %v34_v6 = vrot.slane %v33_v5, 1 }
  0x1e   :  { %v35_v7 = vadd.f32 %v34_v6, %v33_v5 }
  0x20   :  { %36 = vrot.lane.b32.xlu0 %v35_v7, %s155_s24 }
  0x92   :  { %v37_v8 = vpop.permute.xlu0 %36 }
  0x93   :  { %v38_v9 = vadd.f32 %v37_v8, %v35_v7 }
  0x95   :  { %39 = vrot.lane.b32.xlu0 %v38_v9, %s156_s25 }
 0x107   :  { %v40_v12 = vpop.permute.xlu0 %39 }
 0x108   :  { %v41_v14 = vadd.f32 %v40_v12, %v38_v9 }
 0x10a   :  { %v42_v15 = vmul.f32 0.125, %v41_v14 }
 0x10c   :  { %v46_v16 = vrot.slane %v42_v15, %v45_v13 }
 0x10e   :  { %v47_v17 = vsub.f32 %v27_v0, %v46_v16 }
 0x110   :  { %v48_v18 = vmul.f32 %v47_v17, %v47_v17 }
 0x112   :  { %v49_v19 = vsel %vm28_vm0, %v48_v18, 0.0 }
 0x113   :  { %v50_v20 = vrot.slane %v49_v19, 4 }
 0x115   :  { %v51_v21 = vadd.f32 %v50_v20, %v49_v19 }
 0x117   :  { %v52_v22 = vrot.slane %v51_v21, 2 }
 0x119   :  { %v53_v23 = vadd.f32 %v52_v22, %v51_v21 }
 0x11b   :  { %v54_v24 = vrot.slane %v53_v23, 1 }
 0x11d   :  { %v55_v25 = vadd.f32 %v54_v24, %v53_v23 }
 0x11f   :  { %56 = vrot.lane.b32.xlu1 %v55_v25, %s155_s24 }
 0x191   :  { %v57_v26 = vpop.permute.xlu1 %56 }
 0x192   :  { %v58_v27 = vadd.f32 %v57_v26, %v55_v25 }
 0x194   :  { %59 = vrot.lane.b32.xlu1 %v58_v27, %s156_s25 }
 0x206   :  { %v60_v28 = vpop.permute.xlu1 %59 }
 0x207   :  { %v61_v29 = vadd.f32 %v60_v28, %v58_v27 }
 0x209   :  { %v62_v30 = vmul.f32 0.125, %v61_v29 }
 0x20b   :  { %v63_v31 = vadd.f32 1e-05, %v62_v30 }
 0x20d   :  { %104 = vrsqrt.f32 %v63_v31 }
 0x217   :  { %v105_v33 = vpop.eup %104 }
 0x218   :  { %v66_v34 = vmul.f32 %v105_v33, %v65_v32 }
 0x21a   :  { %v68_v36 = vmul.f32 %v66_v34, %v42_v15  ;;  %v74_v37 = vrot.slane %v66_v34, %v45_v13 }
 0x21c   :  { %v69_v38 = vsub.f32 %v67_v35, %v68_v36  ;;  %v76_v39 = vmul.f32 %v74_v37, %v27_v0 }
 0x21e   :  { %v81_v40 = vrot.slane %v69_v38, %v45_v13 }
 0x220   :  { %v83_v41 = vadd.f32 %v81_v40, %v76_v39 }
 0x222   :  { %84 = vst [vmem:[#allocation5] sm:$0x3] %v83_v41 }
 0x223   :  { %139 = shalt.err (!%p136_p12)
}
 0x224   :  { %s140_s2 = scalar_lea.hbm %s213_s3, 32 }
 0x225   :  { %p141_p13 = scmp.ne.s32.totalorder %s213_s3, %s140_s2  ;;  %p144_p0 = scmp.lt.u32.totalorder %s140_s2, %s213_s3 }
 0x227   :  { %p146_p1 = pnand %p144_p0, %p141_p13 }
 0x229   :  { %149 = shalt.err (!%p146_p1)
}
 0x22a   :  { %94 = dma.vmem_to_hbm [thread:$0]  %s92_s30, 32, %s213_s3, [#allocation4]  }
 0x22b   :  { %152 = dma.done.wait [#allocation4], 32  }
 0x22c   :  { %153 = vsyncadd [#allocation4], 4294967264 }
 0x22d   :  { %98 = vsyncpa [#allocation3], 1 }
 0x22e   :  { %99 = vsyncpa [#allocation4], 1 }

</bundles_post_ra>
